<compile_context>
chip_gen: v7x
topology: tpu7x:2x2x1
jax: 0.10.0
libtpu: 0.0.40
codegen_flags: <defaults>
</compile_context>

<pallas_src>
import functools

import jax
import jax.numpy as jnp
from jax import lax
from jax.experimental import pallas as pl
from jax.experimental.pallas import tpu as pltpu

THRESHOLD = 0.9
EXPLORATION_WEIGHT = 1000.0

_SUBLANE = 8
_LANE = 128
_ALIGN = _SUBLANE * _LANE          # 1024: rows are kept a multiple of 8
_MAX_TILE_ROWS = 4096              # (4096, 128) f32 tile = 2 MiB / input / buffer


def _round_up(x, m):
    return ((x + m - 1) // m) * m


def _dve_kernel(reward_ref, pred_ref, sel_ref, out_ref, logp_acc, pred_acc, *,
                tile_rows, valid_rows_last, ragged_last, single_log,
                inv_n, pad_count, threshold, exploration_weight):
    i = pl.program_id(0)
    last = pl.num_programs(0) - 1

    @pl.when(i == 0)
    def _init():
        logp_acc[...] = jnp.zeros_like(logp_acc)
        pred_acc[...] = jnp.zeros_like(pred_acc)

    x = pred_ref[...]                                   # (tile_rows, 128) f32
    neg100 = jnp.float32(-100.0)

    if single_log:
        # Selector is binary {0,1}: one log per element (exact for 0/1 labels).
        y = sel_ref[...]
        if jnp.issubdtype(y.dtype, jnp.floating):
            sel_on = y > 0.5
        else:
            sel_on = y != 0                             # int8 / bool selector
        p_corr = jnp.where(sel_on, x, 1.0 - x)
        logp = jnp.maximum(jnp.log(p_corr), neg100)     # == -BCE per element
    else:
        # Generic (soft-label) BCE, matches F.binary_cross_entropy exactly.
        y = sel_ref[...].astype(jnp.float32)
        log_x = jnp.maximum(jnp.log(x), neg100)
        log_1mx = jnp.maximum(jnp.log(1.0 - x), neg100)
        logp = y * log_x + (1.0 - y) * log_1mx          # == -BCE per element

    def _accumulate(lp, xv):
        # Lane/sublane-preserving partial sums: pure vreg adds on the VPU.
        logp_acc[...] += lp.reshape(-1, _SUBLANE, _LANE).sum(axis=0)
        pred_acc[...] += xv.reshape(-1, _SUBLANE, _LANE).sum(axis=0)

    if ragged_last:
        # Only the final block can overhang the (rows, 128) array; gate the tail
        # mask to that single step so every other step is mask-free.
        @pl.when(i == last)
        def _masked():
            row = lax.broadcasted_iota(jnp.int32, (tile_rows, _LANE), 0)
            m = row < valid_rows_last
            _accumulate(jnp.where(m, logp, 0.0), jnp.where(m, x, 0.0))

        @pl.when(i != last)
        def _unmasked():
            _accumulate(logp, x)
    else:
        _accumulate(logp, x)

    @pl.when(i == last)
    def _finalize():
        # Cross-lane/sublane reduce of the (8,128) partials (XLU) + scalar math.
        bce_sum = -jnp.sum(logp_acc[...])
        pred_sum = jnp.sum(pred_acc[...]) - jnp.float32(pad_count)
        mean_pred = pred_sum * jnp.float32(inv_n)
        search = (jnp.maximum(mean_pred - jnp.float32(threshold), 0.0)
                  + jnp.maximum(jnp.float32(1.0 - threshold) - mean_pred, 0.0))
        out_ref[0, 0] = (reward_ref[0] * bce_sum
                         + jnp.float32(exploration_weight) * search)


def dve_loss(pred_dataval, selector_input, reward_input,
             threshold=THRESHOLD, exploration_weight=EXPLORATION_WEIGHT, *,
             binary_labels=None, max_tile_rows=_MAX_TILE_ROWS):
    """Pallas TPU implementation of DveLoss.forward. Returns a float32 scalar."""
    pred = jnp.asarray(pred_dataval, jnp.float32).reshape(-1)
    sel = jnp.asarray(selector_input).reshape(-1)
    n = int(pred.shape[0])
    assert sel.shape[0] == n and n > 0

    sel_is_narrow = jnp.issubdtype(sel.dtype, jnp.integer) or sel.dtype == jnp.bool_
    if sel_is_narrow:
        # Keep the Bernoulli selector narrow in HBM (1 B/elem), single-log BCE.
        sel = sel.astype(jnp.int8)
        single_log = True
    else:
        sel = sel.astype(jnp.float32)
        # Default to the exact two-log BCE for float labels (safe for soft labels);
        # binary_labels=True opts into the cheaper single-log form for {0,1} labels.
        single_log = bool(binary_labels) if binary_labels is not None else False

    # Geometry: view the flat input as (rows, 128) with rows % 8 == 0.
    # If n % 1024 == 0 the reshape is free (no pad, no copy); otherwise pad
    # minimally (< 1024 elements) with pred=1 / sel=1 (exactly-zero BCE term);
    # the pred-sum is corrected by pad_count in the in-kernel epilogue.
    padded_n = _round_up(n, _ALIGN)
    pad = padded_n - n
    if pad:
        # TODO(synk): a manual-DMA (memory_space=pl.ANY) path could stream the
        # ragged tail directly and avoid even this single O(n) pad copy.
        pred = jnp.pad(pred, (0, pad), constant_values=1.0)
        sel = jnp.pad(sel, (0, pad), constant_values=1)
    rows = padded_n // _LANE

    # Defensive: keep block rows a multiple of 32 (valid for f32 and int8 tiling).
    max_tile_rows = max(_round_up(int(max_tile_rows), 32), 32)
    if rows <= max_tile_rows:
        tile_rows = rows            # single full-extent block: always layout-legal
    else:
        tile_rows = max_tile_rows
    num_steps = pl.cdiv(rows, tile_rows)
    valid_rows_last = rows - (num_steps - 1) * tile_rows
    ragged_last = valid_rows_last != tile_rows

    pred2d = pred.reshape(rows, _LANE)
    sel2d = sel.reshape(rows, _LANE)
    reward = jnp.asarray(reward_input, jnp.float32).reshape(-1)[:1]   # shape (1,)

    kernel = functools.partial(
        _dve_kernel,
        tile_rows=tile_rows,
        valid_rows_last=int(valid_rows_last),
        ragged_last=bool(ragged_last),
        single_log=single_log,
        inv_n=1.0 / n,
        pad_count=float(pad),
        threshold=float(threshold),
        exploration_weight=float(exploration_weight),
    )

    sel_bytes = 1 if sel_is_narrow else 4
    cost = pl.CostEstimate(
        flops=8 * padded_n,
        transcendentals=(1 if single_log else 2) * padded_n,
        bytes_accessed=padded_n * 4 + padded_n * sel_bytes + 16,
    )

    tile_map = lambda i: (i, 0)
    out = pl.pallas_call(
        kernel,
        out_shape=jax.ShapeDtypeStruct((1, 1), jnp.float32),
        grid_spec=pltpu.PrefetchScalarGridSpec(
            num_scalar_prefetch=0,
            grid=(num_steps,),
            in_specs=[
                pl.BlockSpec(memory_space=pltpu.MemorySpace.SMEM),   # reward (1,)
                pl.BlockSpec((tile_rows, _LANE), tile_map),          # pred tile
                pl.BlockSpec((tile_rows, _LANE), tile_map),          # selector tile
            ],
            out_specs=pl.BlockSpec(memory_space=pltpu.MemorySpace.SMEM),
            scratch_shapes=[
                pltpu.VMEM((_SUBLANE, _LANE), jnp.float32),  # sum of +log terms
                pltpu.VMEM((_SUBLANE, _LANE), jnp.float32),  # sum of pred
            ],
        ),
        compiler_params=pltpu.CompilerParams(
            dimension_semantics=("arbitrary",),
            vmem_limit_bytes=32 * 1024 * 1024,
        ),
        cost_estimate=cost,
    )(reward, pred2d, sel2d)

    return out[0, 0]


def _reference(pred, sel, reward, threshold=THRESHOLD, expl_w=EXPLORATION_WEIGHT):
    pred = jnp.asarray(pred, jnp.float32).reshape(-1)
    sel = jnp.asarray(sel, jnp.float32).reshape(-1)
    log_x = jnp.maximum(jnp.log(pred), -100.0)
    log_1mx = jnp.maximum(jnp.log(1.0 - pred), -100.0)
    bce = -(sel * log_x + (1.0 - sel) * log_1mx)
    loss = jnp.sum(bce)
    mean_pred = jnp.mean(pred)
    search = (jnp.maximum(mean_pred - threshold, 0.0)
              + jnp.maximum(1.0 - threshold - mean_pred, 0.0))
    return reward * loss + expl_w * search


if __name__ == "__main__":
    key = jax.random.PRNGKey(0)

    def make_case(k, n):
        k1, k2 = jax.random.split(k)
        # pred_dataval is a sigmoid output -> (0, 1); selector is Bernoulli(p=pred).
        p = jax.nn.sigmoid(jax.random.normal(k1, (n, 1), jnp.float32))
        s = jax.random.bernoulli(k2, p)        # bool
        return p, s

    reward = 0.37
    keys = jax.random.split(key, 4)

    # 1) Aligned fast path (n % 1024 == 0): zero-copy reshape, no pad, no mask.
    p1, s1 = make_case(keys[0], 4096)
    out1 = jax.block_until_ready(dve_loss(p1, s1.astype(jnp.float32), reward))
    ref1 = _reference(p1, s1.astype(jnp.float32), reward)
    assert jnp.allclose(out1, ref1, rtol=1e-4, atol=1e-3), (out1, ref1)

    # 2) Ragged n (minimal pad) + low threshold so the exploration term is active.
    p2, s2 = make_case(keys[1], 2000)
    s2f = s2.astype(jnp.float32)
    out2 = jax.block_until_ready(dve_loss(p2, s2f, reward, threshold=0.45))
    ref2 = _reference(p2, s2f, reward, threshold=0.45)
    assert jnp.allclose(out2, ref2, rtol=1e-4, atol=1e-3), (out2, ref2)

    # 3) Multiple tiles + ragged final block (exercises the pl.when-gated tail
    #    mask and cross-step VMEM accumulation).
    p3, s3 = make_case(keys[2], 5000)
    s3f = s3.astype(jnp.float32)
    out3 = jax.block_until_ready(dve_loss(p3, s3f, reward, max_tile_rows=32))
    ref3 = _reference(p3, s3f, reward)
    assert jnp.allclose(out3, ref3, rtol=1e-4, atol=1e-3), (out3, ref3)

    # 4) Narrow (bool -> int8) selector fast path with single-log BCE.
    p4, s4 = make_case(keys[3], 8192)
    out4 = jax.block_until_ready(dve_loss(p4, s4, reward))        # bool selector
    ref4 = _reference(p4, s4.astype(jnp.float32), reward)
    assert jnp.allclose(out4, ref4, rtol=1e-4, atol=1e-3), (out4, ref4)

    # 5) Single-log opt-in on float {0,1} labels (matches the generic path).
    out5 = jax.block_until_ready(dve_loss(p2, s2f, reward, binary_labels=True))
    ref5 = _reference(p2, s2f, reward)
    assert jnp.allclose(out5, ref5, rtol=1e-4, atol=1e-3), (out5, ref5)

    print("KERNEL_OK")
</pallas_src>

<mosaic_0001>
module attributes {stable_mosaic.version = 11 : i64} {
  func.func @_dve_kernel(%arg0: i32, %arg1: memref<1xf32, #tpu.memory_space<smem>>, %arg2: memref<32x128xf32, #tpu.memory_space<vmem>>, %arg3: memref<32x128xf32, #tpu.memory_space<vmem>>, %arg4: memref<1x1xf32, #tpu.memory_space<smem>>, %arg5: memref<8x128xf32, #tpu.memory_space<vmem>>, %arg6: memref<8x128xf32, #tpu.memory_space<vmem>>) attributes {dimension_semantics = [#tpu.dimension_semantics<arbitrary>], iteration_bounds = array<i64: 1>, scalar_prefetch = 0 : i64, scratch_operands = 2 : i64, tpu.core_type = #tpu.core_type<tc>, window_params = [{transform_indices = @transform_0, window_bounds = array<i64: 1>}, {transform_indices = @transform_1, window_bounds = array<i64: 32, 128>}, {transform_indices = @transform_2, window_bounds = array<i64: 32, 128>}, {transform_indices = @transform_3, window_bounds = array<i64: 1, 1>}]} {
    %c0_i32 = arith.constant 0 : i32
    %0 = arith.cmpi eq, %arg0, %c0_i32 : i32
    %1 = arith.extui %0 : i1 to i32
    %c0_i32_0 = arith.constant 0 : i32
    %2 = arith.cmpi ne, %1, %c0_i32_0 : i32
    scf.if %2 {
      %cst_19 = arith.constant 0.000000e+00 : f32
      %31 = vector.broadcast %cst_19 : f32 to vector<8x128xf32>
      %c0_20 = arith.constant 0 : index
      %c0_21 = arith.constant 0 : index
      %32 = vector.load %arg5[%c0_20, %c0_21] : memref<8x128xf32, #tpu.memory_space<vmem>>, vector<8x128xf32>
      tpu.vector_store %arg5[%c0_20, %c0_21], %31 {strides = array<i32>} : memref<8x128xf32, #tpu.memory_space<vmem>>, vector<8x128xf32>,
      %cst_22 = arith.constant 0.000000e+00 : f32
      %33 = vector.broadcast %cst_22 : f32 to vector<8x128xf32>
      %c0_23 = arith.constant 0 : index
      %c0_24 = arith.constant 0 : index
      %34 = vector.load %arg6[%c0_23, %c0_24] : memref<8x128xf32, #tpu.memory_space<vmem>>, vector<8x128xf32>
      tpu.vector_store %arg6[%c0_23, %c0_24], %33 {strides = array<i32>} : memref<8x128xf32, #tpu.memory_space<vmem>>, vector<8x128xf32>,
    } else {
    }
    %c0 = arith.constant 0 : index
    %c0_1 = arith.constant 0 : index
    %3 = vector.load %arg2[%c0, %c0_1] : memref<32x128xf32, #tpu.memory_space<vmem>>, vector<32x128xf32>
    %c0_2 = arith.constant 0 : index
    %c0_3 = arith.constant 0 : index
    %4 = vector.load %arg3[%c0_2, %c0_3] : memref<32x128xf32, #tpu.memory_space<vmem>>, vector<32x128xf32>
    %5 = math.log %3 : vector<32x128xf32>
    %cst = arith.constant -1.000000e+02 : f32
    %6 = vector.broadcast %cst : f32 to vector<32x128xf32>
    %7 = arith.maximumf %5, %6 : vector<32x128xf32>
    %cst_4 = arith.constant 1.000000e+00 : f32
    %8 = vector.broadcast %cst_4 : f32 to vector<32x128xf32>
    %9 = arith.subf %8, %3 : vector<32x128xf32>
    %10 = math.log %9 : vector<32x128xf32>
    %cst_5 = arith.constant -1.000000e+02 : f32
    %11 = vector.broadcast %cst_5 : f32 to vector<32x128xf32>
    %12 = arith.maximumf %10, %11 : vector<32x128xf32>
    %13 = arith.mulf %4, %7 : vector<32x128xf32>
    %cst_6 = arith.constant 1.000000e+00 : f32
    %14 = vector.broadcast %cst_6 : f32 to vector<32x128xf32>
    %15 = arith.subf %14, %4 : vector<32x128xf32>
    %16 = arith.mulf %15, %12 : vector<32x128xf32>
    %17 = arith.addf %13, %16 : vector<32x128xf32>
    %c0_7 = arith.constant 0 : index
    %c0_8 = arith.constant 0 : index
    %18 = vector.load %arg5[%c0_7, %c0_8] : memref<8x128xf32, #tpu.memory_space<vmem>>, vector<8x128xf32>
    %19 = vector.shape_cast %17 : vector<32x128xf32> to vector<4x8x128xf32>
    %cst_9 = arith.constant dense<0.000000e+00> : vector<8x128xf32>
    %20 = vector.multi_reduction <add>, %19, %cst_9 [0] : vector<4x8x128xf32> to vector<8x128xf32>
    %21 = arith.addf %18, %20 : vector<8x128xf32>
    %c0_10 = arith.constant 0 : index
    %c0_11 = arith.constant 0 : index
    %22 = vector.load %arg5[%c0_10, %c0_11] : memref<8x128xf32, #tpu.memory_space<vmem>>, vector<8x128xf32>
    tpu.vector_store %arg5[%c0_10, %c0_11], %21 {strides = array<i32>} : memref<8x128xf32, #tpu.memory_space<vmem>>, vector<8x128xf32>,
    %c0_12 = arith.constant 0 : index
    %c0_13 = arith.constant 0 : index
    %23 = vector.load %arg6[%c0_12, %c0_13] : memref<8x128xf32, #tpu.memory_space<vmem>>, vector<8x128xf32>
    %24 = vector.shape_cast %3 : vector<32x128xf32> to vector<4x8x128xf32>
    %cst_14 = arith.constant dense<0.000000e+00> : vector<8x128xf32>
    %25 = vector.multi_reduction <add>, %24, %cst_14 [0] : vector<4x8x128xf32> to vector<8x128xf32>
    %26 = arith.addf %23, %25 : vector<8x128xf32>
    %c0_15 = arith.constant 0 : index
    %c0_16 = arith.constant 0 : index
    %27 = vector.load %arg6[%c0_15, %c0_16] : memref<8x128xf32, #tpu.memory_space<vmem>>, vector<8x128xf32>
    tpu.vector_store %arg6[%c0_15, %c0_16], %26 {strides = array<i32>} : memref<8x128xf32, #tpu.memory_space<vmem>>, vector<8x128xf32>,
    %c0_i32_17 = arith.constant 0 : i32
    %28 = arith.cmpi eq, %arg0, %c0_i32_17 : i32
    %29 = arith.extui %28 : i1 to i32
    %c0_i32_18 = arith.constant 0 : i32
    %30 = arith.cmpi ne, %29, %c0_i32_18 : i32
    scf.if %30 {
      %c0_19 = arith.constant 0 : index
      %c0_20 = arith.constant 0 : index
      %31 = vector.load %arg5[%c0_19, %c0_20] : memref<8x128xf32, #tpu.memory_space<vmem>>, vector<8x128xf32>
      %32 = vector.shape_cast %31 : vector<8x128xf32> to vector<1x8x128xf32>
      %cst_21 = arith.constant dense<0.000000e+00> : vector<1xf32>
      %33 = vector.multi_reduction <add>, %32, %cst_21 [1, 2] : vector<1x8x128xf32> to vector<1xf32>
      %34 = vector.shape_cast %33 : vector<1xf32> to vector<1x1x1xf32>
      %35 = vector.extract %34[0, 0, 0] : f32 from vector<1x1x1xf32>
      %cst_22 = arith.constant 0.000000e+00 : f32
      %36 = arith.subf %cst_22, %35 : f32
      %c0_23 = arith.constant 0 : index
      %c0_24 = arith.constant 0 : index
      %37 = vector.load %arg6[%c0_23, %c0_24] : memref<8x128xf32, #tpu.memory_space<vmem>>, vector<8x128xf32>
      %38 = vector.shape_cast %37 : vector<8x128xf32> to vector<1x8x128xf32>
      %cst_25 = arith.constant dense<0.000000e+00> : vector<1xf32>
      %39 = vector.multi_reduction <add>, %38, %cst_25 [1, 2] : vector<1x8x128xf32> to vector<1xf32>
      %40 = vector.shape_cast %39 : vector<1xf32> to vector<1x1x1xf32>
      %41 = vector.extract %40[0, 0, 0] : f32 from vector<1x1x1xf32>
      %cst_26 = arith.constant 0.000000e+00 : f32
      %42 = arith.subf %41, %cst_26 : f32
      %cst_27 = arith.constant 2.44140625E-4 : f32
      %43 = arith.mulf %42, %cst_27 : f32
      %cst_28 = arith.constant 0.899999976 : f32
      %44 = arith.subf %43, %cst_28 : f32
      %cst_29 = arith.constant 0.000000e+00 : f32
      %45 = arith.maximumf %44, %cst_29 : f32
      %cst_30 = arith.constant 1.000000e-01 : f32
      %46 = arith.subf %cst_30, %43 : f32
      %cst_31 = arith.constant 0.000000e+00 : f32
      %47 = arith.maximumf %46, %cst_31 : f32
      %48 = arith.addf %45, %47 : f32
      %c0_32 = arith.constant 0 : index
      %49 = memref.load %arg1[%c0_32] : memref<1xf32, #tpu.memory_space<smem>>
      %50 = arith.mulf %49, %36 : f32
      %cst_33 = arith.constant 1.000000e+03 : f32
      %51 = arith.mulf %cst_33, %48 : f32
      %52 = arith.addf %50, %51 : f32
      %c0_34 = arith.constant 0 : index
      %c0_35 = arith.constant 0 : index
      %53 = memref.load %arg4[%c0_34, %c0_35] : memref<1x1xf32, #tpu.memory_space<smem>>
      memref.store %52, %arg4[%c0_34, %c0_35] : memref<1x1xf32, #tpu.memory_space<smem>>
    } else {
    }
    return
  }
  func.func @transform_0(%arg0: i32) -> i32 {
    %c0_i32 = arith.constant 0 : i32
    %c0_i32_0 = arith.constant 0 : i32
    return %c0_i32 : i32
  }
  func.func @transform_1(%arg0: i32) -> (i32, i32) {
    %c0_i32 = arith.constant 0 : i32
    %c0_i32_0 = arith.constant 0 : i32
    return %arg0, %c0_i32 : i32, i32
  }
  func.func @transform_2(%arg0: i32) -> (i32, i32) {
    %c0_i32 = arith.constant 0 : i32
    %c0_i32_0 = arith.constant 0 : i32
    return %arg0, %c0_i32 : i32, i32
  }
  func.func @transform_3(%arg0: i32) -> (i32, i32) {
    %c0_i32 = arith.constant 0 : i32
    %c0_i32_0 = arith.constant 0 : i32
    %c0_i32_1 = arith.constant 0 : i32
    return %c0_i32, %c0_i32_0 : i32, i32
  }
}

</mosaic_0001>

<bundles_post_ra>
// kernel: tpu_custom_call.1
= control target key start
LH: loop header
LB: loop body
LE: loop exit
PB: predicated region body
PF: predicated region fallthrough
CT: control target
= control target key end

     0   :  { %9 = vsyncpa [#allocation6], 0  ;;  %s322_s0 = inlined_call_operand.<no memory space> [shape: f32[1], index: 0, kind: input, shape index: {}]   ;;  %s323_s1 = inlined_call_operand.hbm [shape: f32[32,128], index: 1, kind: input, shape index: {}]   ;;  %s324_s2 = inlined_call_operand.hbm [shape: f32[32,128], index: 2, kind: input, shape index: {}]   ;;  %s325_s3 = inlined_call_operand.hbm [shape: f32[1,1], index: 3, kind: output, shape index: {}]  }
   0x1   :  { %10 = vsyncpa [#allocation9], 0 }
   0x2   :  { %11 = vsyncpa [#allocation7], 0  ;;  %s252_s12 = smov [#allocation5]   ;;  %s192_s16 = scalar_lea.hbm %s323_s1, 512 }
   0x3   :  { %s19_s13 = sshll.u32 %s252_s12, 4  ;;  %p193_p0 = scmp.ne.s32.totalorder %s323_s1, %s192_s16  ;;  %s20_s13 = int_to_ptr.vmem [resolvable:$true] %s19_s13 }
   0x4   :  { %p196_p1 = scmp.lt.u32.totalorder %s192_s16, %s323_s1 }
   0x6   :  { %p198_p2 = pnand %p196_p1, %p193_p0 }
   0x8   :  { %201 = shalt.err (!%p198_p2)
}
   0x9   :  { %s202_s21 = scalar_lea.vmem %s20_s13, 512  ;;  %p207_p4 = scmp.lt.s32.totalorder %s20_s13, %s20_s13 }
   0xa   :  { %p203_p3 = scmp.ne.s32.totalorder %s20_s13, %s202_s21  ;;  %p208_p5 = scmp.lt.s32.totalorder %s202_s21, %s202_s21 }
   0xc   :  { %p209_p6 = por %p208_p5, %p207_p4 }
   0xe   :  { %p210_p7 = pnand %p209_p6, %p203_p3 }
  0x10   :  { %213 = shalt.err (!%p210_p7)
}
  0x11   :  { %s253_s22 = smov 128   ;;  %s254_s23 = smov 8  }
  0x12   :  { %25 = dma.hbm_to_vmem [thread:$0]  %s323_s1, 512, %s20_s13, [#allocation6], %s253_s22, %s253_s22, %s254_s23  }
  0x13   :  { %s255_s26 = smov [#allocation8]   ;;  %s214_s30 = scalar_lea.hbm %s324_s2, 512 }
  0x14   :  { %s31_s27 = sshll.u32 %s255_s26, 4  ;;  %p215_p8 = scmp.ne.s32.totalorder %s324_s2, %s214_s30  ;;  %s32_s27 = int_to_ptr.vmem [resolvable:$true] %s31_s27 }
  0x15   :  { %p218_p9 = scmp.lt.u32.totalorder %s214_s30, %s324_s2 }
  0x17   :  { %p220_p10 = pnand %p218_p9, %p215_p8 }
  0x19   :  { %223 = shalt.err (!%p220_p10)
}
  0x1a   :  { %s224_s8 = scalar_lea.vmem %s32_s27, 512  ;;  %p229_p12 = scmp.lt.s32.totalorder %s32_s27, %s32_s27 }
  0x1b   :  { %p225_p11 = scmp.ne.s32.totalorder %s32_s27, %s224_s8  ;;  %p230_p13 = scmp.lt.s32.totalorder %s224_s8, %s224_s8 }
  0x1d   :  { %p231_p0 = por %p230_p13, %p229_p12 }
  0x1f   :  { %p232_p1 = pnand %p231_p0, %p225_p11 }
  0x21   :  { %235 = shalt.err (!%p232_p1)
}
  0x22   :  { %37 = dma.hbm_to_vmem [thread:$0]  %s324_s2, 512, %s32_s27, [#allocation9], %s253_s22, %s253_s22, %s254_s23  }
  0x23   :  { %246 = dma.done.wait [#allocation6], 512  }
  0x24   :  { %247 = vsyncadd [#allocation6], 4294966784 }
  0x25   :  { %248 = dma.done.wait [#allocation9], 512  }
  0x26   :  { %249 = vsyncadd [#allocation9], 4294966784  ;;  %v50_v0 = vld [vmem:[#allocation5] sm:$0xff]  ;;  %v51_v1 = vld [vmem:[#allocation5 + $0x8] sm:$0xff]  ;;  %s256_s15 = smov 0.0   ;;  %s236_s26 = scalar_lea.hbm %s325_s3, 16 }
  0x27   :  { %v52_v2 = vld [vmem:[#allocation5 + $0x10] sm:$0xff]  ;;  %v302_v3 = vld [vmem:[#allocation5 + $0x18] sm:$0xff]  ;;  %176 = vlog2.f32 %v50_v0  ;;  %v70_v4 = vsub.f32 1.0, %v50_v0  ;;  %v71_v5 = vsub.f32 1.0, %v51_v1  ;;  %v54_v12 = vld [vmem:[#allocation8] sm:$0xff]  ;;  %v109_v50 = vadd.f32 %v51_v1, %v50_v0  ;;  %p237_p2 = scmp.ne.s32.totalorder %s325_s3, %s236_s26  ;;  %p240_p3 = scmp.lt.u32.totalorder %s236_s26, %s325_s3 }
  0x28   :  { %178 = vlog2.f32 %v51_v1  ;;  %v72_v6 = vsub.f32 1.0, %v52_v2  ;;  %v73_v7 = vsub.f32 1.0, %v302_v3  ;;  %v55_v15 = vld [vmem:[#allocation8 + $0x8] sm:$0xff]  ;;  %v56_v19 = vld [vmem:[#allocation8 + $0x10] sm:$0xff]  ;;  %v57_v23 = vld [vmem:[#allocation8 + $0x18] sm:$0xff]  ;;  %v90_v26 = vsub.f32 1.0, %v54_v12 }
  0x29   :  { %180 = vlog2.f32 %v52_v2  ;;  %v91_v30 = vsub.f32 1.0, %v55_v15  ;;  %v92_v35 = vsub.f32 1.0, %v56_v19  ;;  %v93_v39 = vsub.f32 1.0, %v57_v23  ;;  %p242_p4 = pnand %p240_p3, %p237_p2 }
  0x2a   :  { %182 = vlog2.f32 %v302_v3  ;;  %v110_v55 = vadd.f32 %v109_v50, %v52_v2 }
  0x2b   :  { %184 = vlog2.f32 %v70_v4 }
  0x2c   :  { %186 = vlog2.f32 %v71_v5  ;;  %v111_v57 = vadd.f32 %v110_v55, %v302_v3 }
  0x2d   :  { %188 = vlog2.f32 %v72_v6 }
  0x2e   :  { %190 = vlog2.f32 %v73_v7 }
  0x31   :  { %v177_v8 = vpop.eup %176 }
  0x32   :  { %v179_v9 = vpop.eup %178  ;;  %v59_v10 = vmul.f32 0.6931472, %v177_v8 }
  0x33   :  { %v181_v11 = vpop.eup %180  ;;  %v61_v13 = vmul.f32 0.6931472, %v179_v9 }
  0x34   :  { %v183_v14 = vpop.eup %182  ;;  %v63_v16 = vmul.f32 0.6931472, %v181_v11  ;;  %v66_v17 = vmax.f32 %v59_v10, -100.0 }
  0x35   :  { %v185_v18 = vpop.eup %184  ;;  %v65_v20 = vmul.f32 0.6931472, %v183_v14  ;;  %v67_v21 = vmax.f32 %v61_v13, -100.0 }
  0x36   :  { %v187_v22 = vpop.eup %186  ;;  %v68_v24 = vmax.f32 %v63_v16, -100.0  ;;  %v75_v25 = vmul.f32 0.6931472, %v185_v18  ;;  %v86_v34 = vmul.f32 %v66_v17, %v54_v12 }
  0x37   :  { %v189_v27 = vpop.eup %188  ;;  %v69_v28 = vmax.f32 %v65_v20, -100.0  ;;  %v77_v29 = vmul.f32 0.6931472, %v187_v22  ;;  %v87_v38 = vmul.f32 %v67_v21, %v55_v15 }
  0x38   :  { %v191_v31 = vpop.eup %190  ;;  %v79_v32 = vmul.f32 0.6931472, %v189_v27  ;;  %v82_v33 = vmax.f32 %v75_v25, -100.0  ;;  %v88_v41 = vmul.f32 %v68_v24, %v56_v19 }
  0x39   :  { %v81_v36 = vmul.f32 0.6931472, %v191_v31  ;;  %v83_v37 = vmax.f32 %v77_v29, -100.0  ;;  %v89_v44 = vmul.f32 %v69_v28, %v57_v23 }
  0x3a   :  { %v84_v40 = vmax.f32 %v79_v32, -100.0  ;;  %v94_v42 = vmul.f32 %v90_v26, %v82_v33 }
  0x3b   :  { %v85_v43 = vmax.f32 %v81_v36, -100.0  ;;  %v95_v45 = vmul.f32 %v91_v30, %v83_v37 }
  0x3c   :  { %v96_v46 = vmul.f32 %v92_v35, %v84_v40  ;;  %v98_v47 = vadd.f32 %v94_v42, %v86_v34 }
  0x3d   :  { %v97_v48 = vmul.f32 %v93_v39, %v85_v43  ;;  %v99_v49 = vadd.f32 %v95_v45, %v87_v38 }
  0x3e   :  { %v100_v51 = vadd.f32 %v96_v46, %v88_v41 }
  0x3f   :  { %v101_v52 = vadd.f32 %v97_v48, %v89_v44  ;;  %v103_v53 = vadd.f32 %v99_v49, %v98_v47 }
  0x41   :  { %v104_v54 = vadd.f32 %v103_v53, %v100_v51 }
  0x43   :  { %v105_v56 = vadd.f32 %v104_v54, %v101_v52 }
  0x45   :  { %118 = vadd.xlane.f32.xlu0 %v105_v56 }
  0x49   :  { %129 = vadd.xlane.f32.xlu0 %v111_v57 }
  0xd2   :  { %v119_v58 = vpop.xlane.xlu0 %118 }
  0xd3   :  { %v120_v59 = vrot.slane %v119_v58, 4 }
  0xd5   :  { %v121_v60 = vadd.f32 %v120_v59, %v119_v58 }
  0xd6   :  { %v130_v61 = vpop.xlane.xlu0 %129 }
  0xd7   :  { %v122_v62 = vrot.slane %v121_v60, 2  ;;  %v131_v63 = vrot.slane %v130_v61, 4 }
  0xd9   :  { %v132_v4 = vadd.f32 %v131_v63, %v130_v61  ;;  %v123_v5 = vadd.f32 %v122_v62, %v121_v60 }
  0xdb   :  { %v133_v6 = vrot.slane %v132_v4, 2  ;;  %v124_v0 = vrot.slane %v123_v5, 1 }
  0xdd   :  { %v134_v1 = vadd.f32 %v133_v6, %v132_v4  ;;  %v125_v7 = vadd.f32 %v124_v0, %v123_v5 }
  0xdf   :  { %166 = vpush %v125_v7  ;;  %v135_v8 = vrot.slane %v134_v1, 1 }
  0xe1   :  { %v136_v2 = vadd.f32 %v135_v8, %v134_v1 }
  0xe3   :  { %168 = vpush %v136_v2 }
 0x110   :  { %s167_s2 = spop %166 }
 0x111   :  { %s127_s12 = ssub.f32 0.0, %s167_s2 }
 0x113   :  { %s145_s21 = smul.f32 %s127_s12, %s322_s0 }
 0x114   :  { %s169_s10 = spop %168 }
 0x115   :  { %s138_s11 = smul.f32 0.00024414063, %s169_s10 }
 0x117   :  { %s165_s13 = sadd.f32 -0.9, %s138_s11 }
 0x118   :  { %s141_s14 = ssub.f32 0.1, %s138_s11 }
 0x119   :  { %s140_s16 = smax.f32 %s256_s15, %s165_s13 }
 0x11a   :  { %s142_s17 = smax.f32 %s256_s15, %s141_s14 }
 0x11b   :  { %s143_s18 = sadd.f32 %s142_s17, %s140_s16 }
 0x11d   :  { %s146_s22 = smul.f32 1000.0, %s143_s18 }
 0x11f   :  { %s147_s23 = sadd.f32 %s146_s22, %s145_s21 }
 0x121   :  { %149 = sst [smem:[#allocation10]] %s147_s23 }
 0x122   :  { %245 = shalt.err (!%p242_p4)
}
 0x123   :  { %s257_s4 = smov [#allocation10]  }
 0x124   :  { %157 = dma.smem_to_hbm %s257_s4, 16, %s325_s3, [#allocation7]  }
 0x125   :  { %250 = dma.done.wait [#allocation7], 16  }
 0x126   :  { %251 = vsyncadd [#allocation7], 4294967280 }
 0x127   :  { %161 = sfence }
 0x128   :  { %162 = vsyncpa [#allocation6], 1 }
 0x129   :  { %163 = vsyncpa [#allocation9], 1 }
 0x12a   :  { %164 = vsyncpa [#allocation7], 1 }

</bundles_post_ra>
